<compile_context>
chip_gen: v7x
topology: tpu7x:2x2x1
jax: 0.10.0
libtpu: 0.0.40
codegen_flags: <defaults>
</compile_context>

<pallas_src>
import math

import jax
import jax.numpy as jnp
from jax.experimental import pallas as pl
from jax.experimental.pallas import tpu as pltpu

# ----- ArcFace hyper-parameters (from module __init__) -----
SCALE = 30.0
MARGIN = 0.5
COS_M = math.cos(MARGIN)
SIN_M = math.sin(MARGIN)
THRESH = math.cos(math.pi - MARGIN)
MM = math.sin(math.pi - MARGIN) * MARGIN


def arcface_kernel(label_ref, cosine_ref, out_ref):
    tb, tc = out_ref.shape
    col_base = pl.program_id(1) * tc

    # Offset the label, not the [tb, tc] iota: one [tb, 1] int subtract
    # instead of a full-tile int add per element.
    label_local = label_ref[...] - col_base                 # [tb, 1] i32
    hit = jnp.logical_and(label_local >= 0, label_local < tc)
    tile_has_target = jnp.any(hit)

    @pl.when(jnp.logical_not(tile_has_target))
    def _():
        # Fast path: no row's target class lies in this C tile -> pure scale.
        out_ref[...] = cosine_ref[...] * SCALE

    @pl.when(tile_has_target)
    def _():
        cosine = cosine_ref[...]                            # [tb, tc] f32
        # Exact PyTorch semantics: no clamp on (1 - cosine^2), and only the
        # easy_margin=False path (as in the reference module).
        sine = jnp.sqrt(1.0 - cosine * cosine)
        phi = cosine * COS_M - sine * SIN_M
        phi = jnp.where(cosine > THRESH, phi, cosine - MM)

        col_ids = jax.lax.broadcasted_iota(jnp.int32, (tb, tc), 1)
        # Single select instead of one_hot*phi + (1-one_hot)*cosine.
        out_ref[...] = jnp.where(col_ids == label_local, phi, cosine) * SCALE


def _round_up(x, m):
    return ((x + m - 1) // m) * m


def arcface_loss(cosine, label, *, tile_b=512, tile_c=2048):
    """cosine: [B, C] float32, label: [B] int -> [B, C] float32 logits."""
    B, C = cosine.shape

    # Tile sizes: (8, 128)-aligned, clamped so a single block never hugely
    # exceeds the array; ragged edges are handled by masked edge tiles, so
    # the [B, C] logits are never padded or sliced in the wrapper.
    tb = min(tile_b, _round_up(B, 8))
    tc = min(tile_c, _round_up(C, 128))

    lab2d = label.astype(jnp.int32).reshape(B, 1)

    grid = (pl.cdiv(B, tb), pl.cdiv(C, tc))

    return pl.pallas_call(
        arcface_kernel,
        out_shape=jax.ShapeDtypeStruct((B, C), cosine.dtype),
        grid=grid,
        in_specs=[
            # Tiny label column; constant block index across the inner C
            # loop, so it is not re-DMA'd per C tile.
            pl.BlockSpec((tb, 1), lambda i, j: (i, 0)),
            pl.BlockSpec((tb, tc), lambda i, j: (i, j)),
        ],
        out_specs=pl.BlockSpec((tb, tc), lambda i, j: (i, j)),
        # Output aliases the cosine input buffer (operand 1) -> no second
        # [B, C] HBM allocation when the caller donates the logits.
        input_output_aliases={1: 0},
        compiler_params=pltpu.CompilerParams(
            dimension_semantics=("parallel", "parallel"),
            vmem_limit_bytes=64 * 1024 * 1024,
        ),
    )(lab2d, cosine)


def arcface_ref(cosine, label):
    sine = jnp.sqrt(1.0 - cosine ** 2)
    phi = cosine * COS_M - sine * SIN_M
    phi = jnp.where(cosine > THRESH, phi, cosine - MM)
    one_hot = jax.nn.one_hot(label, cosine.shape[1], dtype=cosine.dtype)
    return (one_hot * phi + (1.0 - one_hot) * cosine) * SCALE


if __name__ == "__main__":
    key = jax.random.PRNGKey(0)
    k1, k2, k3, k4, k5, k6 = jax.random.split(key, 6)

    # Case 1: aligned shapes, single block (default tiles clamped to array).
    B1, C1 = 8, 256
    cos1 = jax.random.uniform(k1, (B1, C1), dtype=jnp.float32,
                              minval=-1.0, maxval=1.0)
    lab1 = jax.random.randint(k2, (B1,), 0, C1, dtype=jnp.int32)
    ref1 = arcface_ref(cos1, lab1)
    out1 = jax.block_until_ready(arcface_loss(cos1, lab1))
    assert out1.shape == (B1, C1)
    assert jnp.allclose(out1, ref1, atol=1e-5, rtol=1e-5)

    # Case 2: ragged shapes + multi-tile grid, no wrapper pad/slice.
    # Exercises masked edge loads/stores, the label-offset compare, and the
    # no-target fast path (tc=128 << C so most tiles skip phi entirely).
    B2, C2 = 10, 300
    cos2 = jax.random.uniform(k3, (B2, C2), dtype=jnp.float32,
                              minval=-1.0, maxval=1.0)
    lab2 = jax.random.randint(k4, (B2,), 0, C2, dtype=jnp.int32)
    ref2 = arcface_ref(cos2, lab2)
    out2 = jax.block_until_ready(
        arcface_loss(cos2, lab2, tile_b=8, tile_c=128))
    assert out2.shape == (B2, C2)
    assert jnp.allclose(out2, ref2, atol=1e-5, rtol=1e-5)

    # Case 3: ragged C with default tiles (edge block wider than remainder).
    B3, C3 = 24, 520
    cos3 = jax.random.uniform(k5, (B3, C3), dtype=jnp.float32,
                              minval=-1.0, maxval=1.0)
    lab3 = jax.random.randint(k6, (B3,), 0, C3, dtype=jnp.int32)
    ref3 = arcface_ref(cos3, lab3)
    out3 = jax.block_until_ready(arcface_loss(cos3, lab3))
    assert out3.shape == (B3, C3)
    assert jnp.allclose(out3, ref3, atol=1e-5, rtol=1e-5)

    print("KERNEL_OK")
</pallas_src>

<mosaic_0001>
module attributes {stable_mosaic.version = 11 : i64} {
  func.func @arcface_kernel(%arg0: i32, %arg1: i32, %arg2: memref<8x1xi32, #tpu.memory_space<vmem>>, %arg3: memref<8x256xf32, #tpu.memory_space<vmem>>, %arg4: memref<8x256xf32, #tpu.memory_space<vmem>>) attributes {dimension_semantics = [#tpu.dimension_semantics<parallel>, #tpu.dimension_semantics<parallel>], iteration_bounds = array<i64: 1, 1>, scalar_prefetch = 0 : i64, scratch_operands = 0 : i64, tpu.core_type = #tpu.core_type<tc>, window_params = [{transform_indices = @transform_0, window_bounds = array<i64: 8, 1>}, {transform_indices = @transform_1, window_bounds = array<i64: 8, 256>}, {transform_indices = @transform_2, window_bounds = array<i64: 8, 256>}]} {
    %c256_i32 = arith.constant 256 : i32
    %0 = arith.muli %arg1, %c256_i32 : i32
    %c0 = arith.constant 0 : index
    %c0_0 = arith.constant 0 : index
    %1 = vector.load %arg2[%c0, %c0_0] : memref<8x1xi32, #tpu.memory_space<vmem>>, vector<8x1xi32>
    %2 = vector.broadcast %0 : i32 to vector<8x1xi32>
    %3 = arith.subi %1, %2 : vector<8x1xi32>
    %c0_i32 = arith.constant 0 : i32
    %4 = vector.broadcast %c0_i32 : i32 to vector<8x1xi32>
    %5 = arith.cmpi sge, %3, %4 : vector<8x1xi32>
    %c256_i32_1 = arith.constant 256 : i32
    %6 = vector.broadcast %c256_i32_1 : i32 to vector<8x1xi32>
    %7 = arith.cmpi slt, %3, %6 : vector<8x1xi32>
    %8 = arith.andi %5, %7 : vector<8x1xi1>
    %cst = arith.constant 1.000000e+00 : f32
    %cst_2 = arith.constant 0.000000e+00 : f32
    %9 = vector.broadcast %cst : f32 to vector<8x1xf32>
    %10 = vector.broadcast %cst_2 : f32 to vector<8x1xf32>
    %11 = arith.select %8, %9, %10 : vector<8x1xi1>, vector<8x1xf32>
    %12 = vector.shape_cast %11 : vector<8x1xf32> to vector<1x8x1xf32>
    %cst_3 = arith.constant dense<0xFF800000> : vector<1xf32>
    %13 = vector.multi_reduction <maximumf>, %12, %cst_3 [1, 2] : vector<1x8x1xf32> to vector<1xf32>
    %14 = vector.shape_cast %13 : vector<1xf32> to vector<1x1x1xf32>
    %15 = vector.extract %14[0, 0, 0] : f32 from vector<1x1x1xf32>
    %cst_4 = arith.constant 0.000000e+00 : f32
    %16 = arith.cmpf ogt, %15, %cst_4 : f32
    %true = arith.constant true
    %17 = arith.xori %16, %true : i1
    %18 = arith.extui %17 : i1 to i32
    %c0_i32_5 = arith.constant 0 : i32
    %19 = arith.cmpi ne, %18, %c0_i32_5 : i32
    scf.if %19 {
      %c0_7 = arith.constant 0 : index
      %c0_8 = arith.constant 0 : index
      %22 = vector.load %arg3[%c0_7, %c0_8] : memref<8x256xf32, #tpu.memory_space<vmem>>, vector<8x256xf32>
      %cst_9 = arith.constant 3.000000e+01 : f32
      %23 = vector.broadcast %cst_9 : f32 to vector<8x256xf32>
      %24 = arith.mulf %22, %23 : vector<8x256xf32>
      %c0_10 = arith.constant 0 : index
      %c0_11 = arith.constant 0 : index
      %25 = vector.load %arg4[%c0_10, %c0_11] : memref<8x256xf32, #tpu.memory_space<vmem>>, vector<8x256xf32>
      tpu.vector_store %arg4[%c0_10, %c0_11], %24 {strides = array<i32>} : memref<8x256xf32, #tpu.memory_space<vmem>>, vector<8x256xf32>,
    } else {
    }
    %20 = arith.extui %16 : i1 to i32
    %c0_i32_6 = arith.constant 0 : i32
    %21 = arith.cmpi ne, %20, %c0_i32_6 : i32
    scf.if %21 {
      %c0_7 = arith.constant 0 : index
      %c0_8 = arith.constant 0 : index
      %22 = vector.load %arg3[%c0_7, %c0_8] : memref<8x256xf32, #tpu.memory_space<vmem>>, vector<8x256xf32>
      %23 = arith.mulf %22, %22 : vector<8x256xf32>
      %cst_9 = arith.constant 1.000000e+00 : f32
      %24 = vector.broadcast %cst_9 : f32 to vector<8x256xf32>
      %25 = arith.subf %24, %23 : vector<8x256xf32>
      %26 = math.sqrt %25 : vector<8x256xf32>
      %cst_10 = arith.constant 0.87758255 : f32
      %27 = vector.broadcast %cst_10 : f32 to vector<8x256xf32>
      %28 = arith.mulf %22, %27 : vector<8x256xf32>
      %cst_11 = arith.constant 0.47942555 : f32
      %29 = vector.broadcast %cst_11 : f32 to vector<8x256xf32>
      %30 = arith.mulf %26, %29 : vector<8x256xf32>
      %31 = arith.subf %28, %30 : vector<8x256xf32>
      %cst_12 = arith.constant -0.87758255 : f32
      %32 = vector.broadcast %cst_12 : f32 to vector<8x256xf32>
      %33 = arith.cmpf ogt, %22, %32 : vector<8x256xf32>
      %cst_13 = arith.constant 0.239712775 : f32
      %34 = vector.broadcast %cst_13 : f32 to vector<8x256xf32>
      %35 = arith.subf %22, %34 : vector<8x256xf32>
      %36 = arith.select %33, %31, %35 : vector<8x256xi1>, vector<8x256xf32>
      %37 = tpu.iota {dimensions = array<i32: 1>} : vector<8x256xi32>
      %38 = vector.broadcast %3 : vector<8x1xi32> to vector<8x256xi32>
      %39 = arith.cmpi eq, %37, %38 : vector<8x256xi32>
      %40 = arith.select %39, %36, %22 : vector<8x256xi1>, vector<8x256xf32>
      %cst_14 = arith.constant 3.000000e+01 : f32
      %41 = vector.broadcast %cst_14 : f32 to vector<8x256xf32>
      %42 = arith.mulf %40, %41 : vector<8x256xf32>
      %c0_15 = arith.constant 0 : index
      %c0_16 = arith.constant 0 : index
      %43 = vector.load %arg4[%c0_15, %c0_16] : memref<8x256xf32, #tpu.memory_space<vmem>>, vector<8x256xf32>
      tpu.vector_store %arg4[%c0_15, %c0_16], %42 {strides = array<i32>} : memref<8x256xf32, #tpu.memory_space<vmem>>, vector<8x256xf32>,
    } else {
    }
    return
  }
  func.func @transform_0(%arg0: i32, %arg1: i32) -> (i32, i32) {
    %c0_i32 = arith.constant 0 : i32
    %c0_i32_0 = arith.constant 0 : i32
    return %arg0, %c0_i32 : i32, i32
  }
  func.func @transform_1(%arg0: i32, %arg1: i32) -> (i32, i32) {
    %c0_i32 = arith.constant 0 : i32
    return %arg0, %arg1 : i32, i32
  }
  func.func @transform_2(%arg0: i32, %arg1: i32) -> (i32, i32) {
    %c0_i32 = arith.constant 0 : i32
    return %arg0, %arg1 : i32, i32
  }
}

</mosaic_0001>

<bundles_post_ra>
// kernel: tpu_custom_call.1
= control target key start
LH: loop header
LB: loop body
LE: loop exit
PB: predicated region body
PF: predicated region fallthrough
CT: control target
= control target key end

     0   :  { %7 = vsyncpa [#allocation3], 0  ;;  %s279_s0 = inlined_call_operand.hbm [shape: s32[8,1], index: 0, kind: input, shape index: {}]   ;;  %s280_s1 = inlined_call_operand.hbm [shape: f32[8,256], index: 1, kind: input, shape index: {}, may-alias: {1,2}]   ;;  %s281_s2 = inlined_call_operand.hbm [shape: f32[8,256], index: 2, kind: output, shape index: {}, may-alias: {1,2}]  }
   0x1   :  { %8 = vsyncpa [#allocation6], 0 }
   0x2   :  { %9 = vsyncpa [#allocation4], 0  ;;  %s216_s9 = smov [#allocation2]   ;;  %s217_s11 = smov [#allocation5]  }
   0x3   :  { %s16_s10 = sshll.u32 %s216_s9, 4  ;;  %s26_s12 = sshll.u32 %s217_s11, 4  ;;  %s17_s10 = int_to_ptr.vmem [resolvable:$true] %s16_s10  ;;  %s27_s12 = int_to_ptr.vmem [resolvable:$true] %s26_s12 }
   0x4   :  { %s144_s15 = scalar_lea.hbm %s279_s0, 128 }
   0x5   :  { %p145_p0 = scmp.ne.s32.totalorder %s279_s0, %s144_s15  ;;  %p148_p1 = scmp.lt.u32.totalorder %s144_s15, %s279_s0 }
   0x7   :  { %p150_p2 = pnand %p148_p1, %p145_p0 }
   0x9   :  { %153 = shalt.err (!%p150_p2)
}
   0xa   :  { %s154_s20 = scalar_lea.vmem %s17_s10, 128  ;;  %p159_p4 = scmp.lt.s32.totalorder %s17_s10, %s17_s10 }
   0xb   :  { %p155_p3 = scmp.ne.s32.totalorder %s17_s10, %s154_s20  ;;  %p160_p5 = scmp.lt.s32.totalorder %s154_s20, %s154_s20 }
   0xd   :  { %p161_p6 = por %p160_p5, %p159_p4 }
   0xf   :  { %p162_p7 = pnand %p161_p6, %p155_p3 }
  0x11   :  { %165 = shalt.err (!%p162_p7)
}
  0x12   :  { %19 = dma.hbm_to_vmem [thread:$0]  %s279_s0, 128, %s17_s10, [#allocation3]  }
  0x13   :  { %s166_s25 = scalar_lea.hbm %s280_s1, 256 }
  0x14   :  { %p167_p8 = scmp.ne.s32.totalorder %s280_s1, %s166_s25  ;;  %p170_p9 = scmp.lt.u32.totalorder %s166_s25, %s280_s1 }
  0x16   :  { %p172_p10 = pnand %p170_p9, %p167_p8 }
  0x18   :  { %175 = shalt.err (!%p172_p10)
}
  0x19   :  { %s176_s30 = scalar_lea.vmem %s27_s12, 256  ;;  %p181_p12 = scmp.lt.s32.totalorder %s27_s12, %s27_s12 }
  0x1a   :  { %p177_p11 = scmp.ne.s32.totalorder %s27_s12, %s176_s30  ;;  %p182_p13 = scmp.lt.s32.totalorder %s176_s30, %s176_s30 }
  0x1c   :  { %p183_p0 = por %p182_p13, %p181_p12 }
  0x1e   :  { %p184_p1 = pnand %p183_p0, %p177_p11 }
  0x20   :  { %187 = shalt.err (!%p184_p1)
}
  0x21   :  { %29 = dma.hbm_to_vmem [thread:$0]  %s280_s1, 256, %s27_s12, [#allocation6]  }
  0x22   :  { %210 = dma.done.wait [#allocation3], 128  }
  0x23   :  { %211 = vsyncadd [#allocation3], 4294967168 }
  0x24   :  { %212 = dma.done.wait [#allocation6], 256  }
  0x25   :  { %213 = vsyncadd [#allocation6], 4294967040  ;;  %v37_v0 = vld [vmem:[#allocation2] sm:$0xff]  ;;  %vm44_vm2 = vcmask 7168   ;;  %v218_v1 = vmov 0.0  }
  0x26   :  { %vm40_vm0 = vcmp.ge.s32.totalorder %v37_v0, 0  ;;  %vm41_vm1 = vcmp.lt.s32.totalorder %v37_v0, 256 }
  0x27   :  { %vm42_vm3 = vmand %vm40_vm0, %vm41_vm1 }
  0x28   :  { %v43_v2 = vsel %vm42_vm3, 1.0, %v218_v1 }
  0x29   :  { %v45_v3 = vsel %vm44_vm2, %v43_v2, -inf }
  0x2a   :  { %46 = vmax.xlane.f32.xlu0 %v45_v3 }
  0xb7   :  { %v47_v4 = vpop.xlane.xlu0 %46 }
  0xb8   :  { %v48_v5 = vrot.slane %v47_v4, 4 }
  0xba   :  { %v49_v6 = vmax.f32 %v47_v4, %v48_v5 }
  0xbc   :  { %v50_v7 = vrot.slane %v49_v6, 2 }
  0xbe   :  { %v51_v8 = vmax.f32 %v49_v6, %v50_v7 }
  0xc0   :  { %v52_v9 = vrot.slane %v51_v8, 1 }
  0xc2   :  { %v53_v10 = vmax.f32 %v51_v8, %v52_v9 }
  0xc4   :  { %132 = vpush %v53_v10 }
  0xf5   :  { %s260_s1 = spop %132 }
  0xf6   :  { %p55_p2 = scmp.gt.f32.partialorder %s260_s1, 0.0 }
  0xf7   :  { %v219_v11 = vmov (%p55_p2), 0   ;;  %v59_v12 = vld [vmem:[#allocation5] sm:$0xff] (%p55_p2)  ;;  %v60_v13 = vld [vmem:[#allocation5 + $0x8] sm:$0xff] (%p55_p2)  ;;  %v91_v28 = vlaneseq (%p55_p2) }
  0xf8   :  { %58 = sbr.rel (!%p55_p2) target bundleno = 382 (0x17e), region = 21  ;;  %139 = vset.pattern.permute.xlu0 (%p55_p2), %v219_v11  ;;  %v61_v14 = vmul.f32 (%p55_p2), %v59_v12, %v59_v12  ;;  %v62_v15 = vmul.f32 (%p55_p2), %v60_v13, %v60_v13  ;;  %v79_v29 = vmul.f32 (%p55_p2), 0.87758255, %v59_v12  ;;  %v80_v30 = vmul.f32 (%p55_p2), 0.87758255, %v60_v13 }
  0xf9   :  { %95 = vperm.xlu0 (%p55_p2), %139, %v37_v0   ;;  %v92_v33 = vand.u32 (%p55_p2), 127, %v91_v28  ;;  %v130_v36 = vadd.f32 (%p55_p2), -0.23971277, %v59_v12  ;;  %v131_v37 = vadd.f32 (%p55_p2), -0.23971277, %v60_v13 }
  0xfa   :  { %v63_v16 = vsub.f32 (%p55_p2), 1.0, %v61_v14  ;;  %v64_v17 = vsub.f32 (%p55_p2), 1.0, %v62_v15  ;;  %vm85_vm8 = vcmp.gt.f32.partialorder (%p55_p2), %v59_v12, -0.87758255  ;;  %vm86_vm9 = vcmp.gt.f32.partialorder (%p55_p2), %v60_v13, -0.87758255 }
  0xfb   :  { %v93_v38 = vadd.s32 (%p55_p2), 128, %v92_v33 }
  0xfc   :  { %140 = vrsqrt.f32 (%p55_p2), %v63_v16  ;;  %vm67_vm4 = vcmp.eq.f32.partialorder (%p55_p2), %v63_v16, inf  ;;  %vm74_vm5 = vcmp.eq.f32.partialorder (%p55_p2), %v64_v17, inf  ;;  %v70_v22 = vand.u32 (%p55_p2), 2147483648, %v63_v16 }
  0xfd   :  { %142 = vrsqrt.f32 (%p55_p2), %v64_v17  ;;  %v77_v23 = vand.u32 (%p55_p2), 2147483648, %v64_v17  ;;  %vm69_vm6 = vcmp.eq.f32.partialorder (%p55_p2), %v63_v16, 0.0  ;;  %vm76_vm7 = vcmp.eq.f32.partialorder (%p55_p2), %v64_v17, 0.0 }
 0x106   :  { %v141_v18 = vpop.eup %140 }
 0x107   :  { %v143_v19 = vpop.eup %142  ;;  %v66_v20 = vmul.f32 %v141_v18, %v63_v16 }
 0x108   :  { %v73_v21 = vmul.f32 %v143_v19, %v64_v17 }
 0x109   :  { %v68_v24 = vsel %vm67_vm4, %v63_v16, %v66_v20 }
 0x10a   :  { %v75_v25 = vsel %vm74_vm5, %v64_v17, %v73_v21  ;;  %v71_v26 = vsel %vm69_vm6, %v70_v22, %v68_v24 }
 0x10b   :  { %v78_v27 = vsel %vm76_vm7, %v77_v23, %v75_v25  ;;  %v81_v31 = vmul.f32 0.47942555, %v71_v26 }
 0x10c   :  { %v82_v32 = vmul.f32 0.47942555, %v78_v27 }
 0x10d   :  { %v83_v34 = vsub.f32 %v79_v29, %v81_v31 }
 0x10e   :  { %v84_v35 = vsub.f32 %v80_v30, %v82_v32 }
 0x10f   :  { %v89_v39 = vsel %vm85_vm8, %v83_v34, %v130_v36 }
 0x110   :  { %v90_v40 = vsel %vm86_vm9, %v84_v35, %v131_v37 }
 0x178   :  { %v96_v41 = vpop.permute.xlu0 %95 }
 0x179   :  { %vm97_vm10 = vcmp.eq.s32.totalorder %v92_v33, %v96_v41  ;;  %vm98_vm11 = vcmp.eq.s32.totalorder %v93_v38, %v96_v41 }
 0x17a   :  { %v99_v42 = vsel %vm97_vm10, %v89_v39, %v59_v12  ;;  %v100_v43 = vsel %vm98_vm11, %v90_v40, %v60_v13 }
 0x17b   :  { %v101_v44 = vmul.f32 30.0, %v99_v42  ;;  %v102_v45 = vmul.f32 30.0, %v100_v43 }
 0x17d   :  { %103 = vst [vmem:[#allocation7] sm:$0xff] %v101_v44  ;;  %104 = vst [vmem:[#allocation7 + $0x8] sm:$0xff] %v102_v45 }
 0x17e PF:  { %107 = sbr.rel (%p55_p2) target bundleno = 389 (0x185), region = 25  ;;  %v108_v46 = vld [vmem:[#allocation5] sm:$0xff] (!%p55_p2)  ;;  %v109_v47 = vld [vmem:[#allocation5 + $0x8] sm:$0xff] (!%p55_p2) }
 0x17f   :  { %v110_v48 = vmul.f32 (!%p55_p2), 30.0, %v108_v46  ;;  %v111_v49 = vmul.f32 (!%p55_p2), 30.0, %v109_v47 }
 0x181   :  { %112 = vst [vmem:[#allocation7] sm:$0xff] (!%p55_p2), %v110_v48  ;;  %113 = vst [vmem:[#allocation7 + $0x8] sm:$0xff] (!%p55_p2), %v111_v49 }
 0x185 PF:  { %s220_s4 = smov [#allocation7]  }
 0x186   :  { %s120_s5 = sshll.u32 %s220_s4, 4  ;;  %s121_s5 = int_to_ptr.vmem [resolvable:$true] %s120_s5 }
 0x187   :  { %s188_s6 = scalar_lea.vmem %s121_s5, 256  ;;  %p193_p4 = scmp.lt.s32.totalorder %s121_s5, %s121_s5 }
 0x188   :  { %p189_p3 = scmp.ne.s32.totalorder %s121_s5, %s188_s6  ;;  %p194_p5 = scmp.lt.s32.totalorder %s188_s6, %s188_s6 }
 0x18a   :  { %p195_p6 = por %p194_p5, %p193_p4 }
 0x18c   :  { %p196_p7 = pnand %p195_p6, %p189_p3 }
 0x18e   :  { %199 = shalt.err (!%p196_p7)
}
 0x18f   :  { %s200_s9 = scalar_lea.hbm %s281_s2, 256 }
 0x190   :  { %p201_p8 = scmp.ne.s32.totalorder %s281_s2, %s200_s9  ;;  %p204_p9 = scmp.lt.u32.totalorder %s200_s9, %s281_s2 }
 0x192   :  { %p206_p10 = pnand %p204_p9, %p201_p8 }
 0x194   :  { %209 = shalt.err (!%p206_p10)
}
 0x195   :  { %123 = dma.vmem_to_hbm [thread:$0]  %s121_s5, 256, %s281_s2, [#allocation4]  }
 0x196   :  { %214 = dma.done.wait [#allocation4], 256  }
 0x197   :  { %215 = vsyncadd [#allocation4], 4294967040 }
 0x198   :  { %127 = vsyncpa [#allocation3], 1 }
 0x199   :  { %128 = vsyncpa [#allocation6], 1 }
 0x19a   :  { %129 = vsyncpa [#allocation4], 1 }

</bundles_post_ra>
